<compile_context>
chip_gen: v7x
topology: tpu7x:2x2x1
jax: 0.10.0
libtpu: 0.0.40
codegen_flags: <defaults>
</compile_context>

<pallas_src>
import jax
import jax.numpy as jnp
import numpy as np
from jax.experimental import pallas as pl
from jax.experimental.pallas import tpu as pltpu

# ---------------- config (small, consistent with the module) ----------------
B = 2                # batch
E = 128              # embed_dim
P = 64               # diff_text_patch (fixed in module)
D16 = 16             # diff_text_dim   (fixed in module)


# ---------------- Pallas kernel: whole-problem fused forward -----------------
def textdiffs_kernel(text_ref, video_ref, wsum_ref, wcomb_ref, btot_ref,
                     text_out_ref, ldiff_out_ref):
    v = video_ref[...]                                    # [B, P, E]  f32
    w = wsum_ref[...]                                     # [P, E]     (w_sum bcast on lanes)

    # Patch contraction first (VPU multiply + sublane reduce over P):
    #   vw[b, :] = sum_p w_sum[p] * video[b, p, :]
    vw = jnp.sum(v * w[None, :, :], axis=1)               # [B, E]

    # Single fused projection (linear_text o linear_sims collapsed to W_comb),
    # plus the fully folded bias (covers b_text, b_sims, b_sum).
    l = jnp.dot(vw, wcomb_ref[...],
                preferred_element_type=jnp.float32) + btot_ref[...]   # [B, E]

    ldiff_out_ref[...] = l
    text_out_ref[...] = text_ref[...] + jnp.exp(l)


def textdiffs_forward(text_features, video_features,
                      w_text, b_text, w_sims, b_sims, w_sum, b_sum):
    """Test-stage TextDiffs forward. Returns (text_out, l_text_diff)."""
    Bv, Pv, Ev = video_features.shape
    assert text_features.shape == (Bv, Ev)

    # ---- wrapper-side weight fusion (static glue, computed once by XLA) ----
    # W_comb[e, e'] = (w_text.T @ w_sims.T)[e, e']    ([E, E])
    w_comb = w_text.T @ w_sims.T
    # Total weight of the P->1 contraction, used to fold the per-patch biases.
    wsum_total = jnp.sum(w_sum)
    #   l = (sum_p w_sum[p] * v[p,:]) @ W_comb
    #       + wsum_total * (b_text @ w_sims.T + b_sims) + b_sum
    b_total = (wsum_total * (b_text @ w_sims.T + b_sims) + b_sum[0]).reshape(1, Ev)
    # w_sum broadcast across the E lanes so the kernel's multiply is lane-dense.
    wsum_b = jnp.broadcast_to(w_sum.reshape(Pv, 1), (Pv, Ev)).astype(jnp.float32)

    out_shapes = (
        jax.ShapeDtypeStruct((Bv, Ev), jnp.float32),   # text_out
        jax.ShapeDtypeStruct((Bv, Ev), jnp.float32),   # l_text_diff
    )

    cost = pl.CostEstimate(
        flops=2 * Bv * Ev * Ev + 2 * Bv * Pv * Ev,
        transcendentals=Bv * Ev,
        bytes_accessed=4 * (Bv * Ev + Bv * Pv * Ev + Pv * Ev + Ev * Ev + Ev + 2 * Bv * Ev),
    )

    text_out, l_text_diff = pl.pallas_call(
        textdiffs_kernel,
        out_shape=out_shapes,
        grid_spec=pltpu.PrefetchScalarGridSpec(
            num_scalar_prefetch=0,
            grid=(1,),                                    # single step; full-array blocks
            in_specs=[
                pl.BlockSpec((Bv, Ev), lambda i: (0, 0)),       # text_features
                pl.BlockSpec((Bv, Pv, Ev), lambda i: (0, 0, 0)),  # video_features
                pl.BlockSpec((Pv, Ev), lambda i: (0, 0)),       # w_sum broadcast
                pl.BlockSpec((Ev, Ev), lambda i: (0, 0)),       # W_comb
                pl.BlockSpec((1, Ev), lambda i: (0, 0)),        # b_total
            ],
            out_specs=[
                pl.BlockSpec((Bv, Ev), lambda i: (0, 0)),       # text_out
                pl.BlockSpec((Bv, Ev), lambda i: (0, 0)),       # l_text_diff
            ],
        ),
        compiler_params=pltpu.CompilerParams(
            dimension_semantics=("arbitrary",)),
        cost_estimate=cost,
    )(text_features, video_features, wsum_b, w_comb, b_total)

    return text_out, l_text_diff


# ---------------- pure-JAX reference (mirrors the PyTorch forward) -----------
def textdiffs_ref(text_features, video_features,
                  w_text, b_text, w_sims, b_sims, w_sum, b_sum):
    v16 = video_features @ w_text.T + b_text              # [B, P, 16]
    sims = v16                                            # run_diffusion identity (Test)
    s = sims @ w_sims.T + b_sims                          # [B, P, E]
    s_perm = jnp.transpose(s, (0, 2, 1))                  # [B, E, P]
    l = (s_perm @ w_sum.T + b_sum)[..., 0]                # [B, E]
    return text_features + jnp.exp(l), l


if __name__ == "__main__":
    key = jax.random.PRNGKey(0)
    k1, k2, k3, k4, k5 = jax.random.split(key, 5)

    text_features = jax.random.normal(k1, (B, E), dtype=jnp.float32)
    video_features = jax.random.normal(k2, (B, P, E), dtype=jnp.float32) * 0.1
    # diff_data is consumed only by the undefined run_diffusion(); unused here.

    # Parameters: module init is eye_ weights / zero bias; add small deterministic
    # perturbations so the fused-weight path is checked non-degenerately.
    w_text = jnp.eye(D16, E, dtype=jnp.float32) + 0.01 * jax.random.normal(k3, (D16, E))
    b_text = 0.01 * jnp.ones((D16,), jnp.float32)
    w_sims = jnp.eye(E, D16, dtype=jnp.float32) + 0.01 * jax.random.normal(k4, (E, D16))
    b_sims = 0.01 * jnp.ones((E,), jnp.float32)
    w_sum = jnp.eye(1, P, dtype=jnp.float32) + 0.01 * jax.random.normal(k5, (1, P))
    b_sum = 0.01 * jnp.ones((1,), jnp.float32)
    # diff_proj (Linear num_frames->embed_dim) exists in __init__ but is unused in forward.

    text_out, l_text_diff = textdiffs_forward(
        text_features, video_features,
        w_text, b_text, w_sims, b_sims, w_sum, b_sum)
    jax.block_until_ready((text_out, l_text_diff))

    ref_out, ref_l = textdiffs_ref(
        text_features, video_features,
        w_text, b_text, w_sims, b_sims, w_sum, b_sum)

    np.testing.assert_allclose(np.asarray(l_text_diff), np.asarray(ref_l),
                               rtol=1e-4, atol=1e-5)
    np.testing.assert_allclose(np.asarray(text_out), np.asarray(ref_out),
                               rtol=1e-4, atol=1e-5)
    print("KERNEL_OK")
</pallas_src>

<mosaic_0001>
module attributes {stable_mosaic.version = 11 : i64} {
  func.func @textdiffs_kernel(%arg0: i32, %arg1: memref<2x128xf32, #tpu.memory_space<vmem>>, %arg2: memref<2x64x128xf32, #tpu.memory_space<vmem>>, %arg3: memref<64x128xf32, #tpu.memory_space<vmem>>, %arg4: memref<128x128xf32, #tpu.memory_space<vmem>>, %arg5: memref<1x128xf32, #tpu.memory_space<vmem>>, %arg6: memref<2x128xf32, #tpu.memory_space<vmem>>, %arg7: memref<2x128xf32, #tpu.memory_space<vmem>>) attributes {dimension_semantics = [#tpu.dimension_semantics<arbitrary>], iteration_bounds = array<i64: 1>, scalar_prefetch = 0 : i64, scratch_operands = 0 : i64, tpu.core_type = #tpu.core_type<tc>, window_params = [{pipeline_mode = #tpu.pipeline_mode<synchronous>, transform_indices = @transform_0, window_bounds = array<i64: 2, 128>}, {pipeline_mode = #tpu.pipeline_mode<synchronous>, transform_indices = @transform_1, window_bounds = array<i64: 2, 64, 128>}, {pipeline_mode = #tpu.pipeline_mode<synchronous>, transform_indices = @transform_2, window_bounds = array<i64: 64, 128>}, {pipeline_mode = #tpu.pipeline_mode<synchronous>, transform_indices = @transform_3, window_bounds = array<i64: 128, 128>}, {pipeline_mode = #tpu.pipeline_mode<synchronous>, transform_indices = @transform_4, window_bounds = array<i64: 1, 128>}, {pipeline_mode = #tpu.pipeline_mode<synchronous>, transform_indices = @transform_5, window_bounds = array<i64: 2, 128>}, {pipeline_mode = #tpu.pipeline_mode<synchronous>, transform_indices = @transform_6, window_bounds = array<i64: 2, 128>}]} {
    %c0 = arith.constant 0 : index
    %c0_0 = arith.constant 0 : index
    %c0_1 = arith.constant 0 : index
    %0 = vector.load %arg2[%c0, %c0_0, %c0_1] : memref<2x64x128xf32, #tpu.memory_space<vmem>>, vector<2x64x128xf32>
    %c0_2 = arith.constant 0 : index
    %c0_3 = arith.constant 0 : index
    %1 = vector.load %arg3[%c0_2, %c0_3] : memref<64x128xf32, #tpu.memory_space<vmem>>, vector<64x128xf32>
    %2 = vector.shape_cast %1 : vector<64x128xf32> to vector<1x64x128xf32>
    %3 = vector.broadcast %2 : vector<1x64x128xf32> to vector<2x64x128xf32>
    %4 = arith.mulf %0, %3 : vector<2x64x128xf32>
    %cst = arith.constant dense<0.000000e+00> : vector<2x128xf32>
    %5 = vector.multi_reduction <add>, %4, %cst [1] : vector<2x64x128xf32> to vector<2x128xf32>
    %c0_4 = arith.constant 0 : index
    %c0_5 = arith.constant 0 : index
    %6 = vector.load %arg4[%c0_4, %c0_5] : memref<128x128xf32, #tpu.memory_space<vmem>>, vector<128x128xf32>
    %cst_6 = arith.constant dense<0.000000e+00> : vector<2x128xf32>
    %7 = tpu.matmul %5, %6, %cst_6 {dimension_numbers = #tpu.dot_dimension_numbers<[1], [0], [0], [1], [0, 0, 1, 1], [], []>} : vector<2x128xf32>, vector<128x128xf32>, vector<2x128xf32> -> vector<2x128xf32>
    %c0_7 = arith.constant 0 : index
    %c0_8 = arith.constant 0 : index
    %8 = vector.load %arg5[%c0_7, %c0_8] : memref<1x128xf32, #tpu.memory_space<vmem>>, vector<1x128xf32>
    %9 = vector.broadcast %8 : vector<1x128xf32> to vector<2x128xf32>
    %10 = arith.addf %7, %9 : vector<2x128xf32>
    %c0_9 = arith.constant 0 : index
    %c0_10 = arith.constant 0 : index
    %11 = vector.load %arg7[%c0_9, %c0_10] : memref<2x128xf32, #tpu.memory_space<vmem>>, vector<2x128xf32>
    tpu.vector_store %arg7[%c0_9, %c0_10], %10 {strides = array<i32>} : memref<2x128xf32, #tpu.memory_space<vmem>>, vector<2x128xf32>,
    %c0_11 = arith.constant 0 : index
    %c0_12 = arith.constant 0 : index
    %12 = vector.load %arg1[%c0_11, %c0_12] : memref<2x128xf32, #tpu.memory_space<vmem>>, vector<2x128xf32>
    %13 = math.exp %10 : vector<2x128xf32>
    %14 = arith.addf %12, %13 : vector<2x128xf32>
    %c0_13 = arith.constant 0 : index
    %c0_14 = arith.constant 0 : index
    %15 = vector.load %arg6[%c0_13, %c0_14] : memref<2x128xf32, #tpu.memory_space<vmem>>, vector<2x128xf32>
    tpu.vector_store %arg6[%c0_13, %c0_14], %14 {strides = array<i32>} : memref<2x128xf32, #tpu.memory_space<vmem>>, vector<2x128xf32>,
    return
  }
  func.func @transform_0(%arg0: i32) -> (i32, i32) {
    %c0_i32 = arith.constant 0 : i32
    %c0_i32_0 = arith.constant 0 : i32
    %c0_i32_1 = arith.constant 0 : i32
    return %c0_i32, %c0_i32_0 : i32, i32
  }
  func.func @transform_1(%arg0: i32) -> (i32, i32, i32) {
    %c0_i32 = arith.constant 0 : i32
    %c0_i32_0 = arith.constant 0 : i32
    %c0_i32_1 = arith.constant 0 : i32
    %c0_i32_2 = arith.constant 0 : i32
    return %c0_i32, %c0_i32_0, %c0_i32_1 : i32, i32, i32
  }
  func.func @transform_2(%arg0: i32) -> (i32, i32) {
    %c0_i32 = arith.constant 0 : i32
    %c0_i32_0 = arith.constant 0 : i32
    %c0_i32_1 = arith.constant 0 : i32
    return %c0_i32, %c0_i32_0 : i32, i32
  }
  func.func @transform_3(%arg0: i32) -> (i32, i32) {
    %c0_i32 = arith.constant 0 : i32
    %c0_i32_0 = arith.constant 0 : i32
    %c0_i32_1 = arith.constant 0 : i32
    return %c0_i32, %c0_i32_0 : i32, i32
  }
  func.func @transform_4(%arg0: i32) -> (i32, i32) {
    %c0_i32 = arith.constant 0 : i32
    %c0_i32_0 = arith.constant 0 : i32
    %c0_i32_1 = arith.constant 0 : i32
    return %c0_i32, %c0_i32_0 : i32, i32
  }
  func.func @transform_5(%arg0: i32) -> (i32, i32) {
    %c0_i32 = arith.constant 0 : i32
    %c0_i32_0 = arith.constant 0 : i32
    %c0_i32_1 = arith.constant 0 : i32
    return %c0_i32, %c0_i32_0 : i32, i32
  }
  func.func @transform_6(%arg0: i32) -> (i32, i32) {
    %c0_i32 = arith.constant 0 : i32
    %c0_i32_0 = arith.constant 0 : i32
    %c0_i32_1 = arith.constant 0 : i32
    return %c0_i32, %c0_i32_0 : i32, i32
  }
}

</mosaic_0001>

<bundles_post_ra>
// kernel: tpu_custom_call.1
= control target key start
LH: loop header
LB: loop body
LE: loop exit
PB: predicated region body
PF: predicated region fallthrough
CT: control target
= control target key end

     0   :  { %12 = vsyncpa [#allocation3], 0  ;;  %s648_s0 = inlined_call_operand.hbm [shape: f32[2,128], index: 0, kind: input, shape index: {}]   ;;  %s649_s1 = inlined_call_operand.hbm [shape: f32[2,64,128], index: 1, kind: input, shape index: {}]   ;;  %s650_s2 = inlined_call_operand.hbm [shape: f32[64,128], index: 2, kind: input, shape index: {}]   ;;  %s651_s3 = inlined_call_operand.hbm [shape: f32[128,128], index: 3, kind: input, shape index: {}]   ;;  %s652_s4 = inlined_call_operand.vmem [shape: f32[1,128], index: 4, kind: input, shape index: {}]   ;;  %s653_s5 = inlined_call_operand.hbm [shape: f32[2,128], index: 5, kind: output, shape index: {0}]   ;;  %s654_s6 = inlined_call_operand.hbm [shape: f32[2,128], index: 6, kind: output, shape index: {1}]  }
   0x1   :  { %13 = vsyncpa [#allocation6], 0 }
   0x2   :  { %14 = vsyncpa [#allocation9], 0 }
   0x3   :  { %15 = vsyncpa [#allocation4], 0 }
   0x4   :  { %16 = vsyncpa [#allocation12], 0  ;;  %s510_s21 = smov [#allocation5]   ;;  %s368_s25 = scalar_lea.hbm %s649_s1, 2048 }
   0x5   :  { %s32_s22 = sshll.u32 %s510_s21, 4  ;;  %p369_p0 = scmp.ne.s32.totalorder %s649_s1, %s368_s25  ;;  %s33_s22 = int_to_ptr.vmem [resolvable:$true] %s32_s22 }
   0x6   :  { %p372_p1 = scmp.lt.u32.totalorder %s368_s25, %s649_s1 }
   0x8   :  { %p374_p2 = pnand %p372_p1, %p369_p0 }
   0xa   :  { %377 = shalt.err (!%p374_p2)
}
   0xb   :  { %s378_s30 = scalar_lea.vmem %s33_s22, 2048  ;;  %p383_p4 = scmp.lt.s32.totalorder %s33_s22, %s33_s22 }
   0xc   :  { %p379_p3 = scmp.ne.s32.totalorder %s33_s22, %s378_s30  ;;  %p384_p5 = scmp.lt.s32.totalorder %s378_s30, %s378_s30 }
   0xe   :  { %p385_p6 = por %p384_p5, %p383_p4 }
  0x10   :  { %p386_p7 = pnand %p385_p6, %p379_p3 }
  0x12   :  { %389 = shalt.err (!%p386_p7)
}
  0x13   :  { %s511_s7 = smov 128   ;;  %s512_s8 = smov 8  }
  0x14   :  { %38 = dma.hbm_to_vmem [thread:$0]  %s649_s1, 2048, %s33_s22, [#allocation6], %s511_s7, %s511_s7, %s512_s8  }
  0x15   :  { %s513_s11 = smov [#allocation2]   ;;  %s514_s13 = smov [#allocation7]  }
  0x16   :  { %s23_s12 = sshll.u32 %s513_s11, 4  ;;  %s44_s14 = sshll.u32 %s514_s13, 4  ;;  %s24_s12 = int_to_ptr.vmem [resolvable:$true] %s23_s12  ;;  %s45_s14 = int_to_ptr.vmem [resolvable:$true] %s44_s14 }
  0x17   :  { %s390_s17 = scalar_lea.hbm %s648_s0, 32 }
  0x18   :  { %p391_p8 = scmp.ne.s32.totalorder %s648_s0, %s390_s17  ;;  %p394_p9 = scmp.lt.u32.totalorder %s390_s17, %s648_s0 }
  0x1a   :  { %p396_p10 = pnand %p394_p9, %p391_p8 }
  0x1c   :  { %399 = shalt.err (!%p396_p10)
}
  0x1d   :  { %s400_s1 = scalar_lea.vmem %s24_s12, 32  ;;  %p405_p12 = scmp.lt.s32.totalorder %s24_s12, %s24_s12 }
  0x1e   :  { %p401_p11 = scmp.ne.s32.totalorder %s24_s12, %s400_s1  ;;  %p406_p13 = scmp.lt.s32.totalorder %s400_s1, %s400_s1 }
  0x20   :  { %p407_p0 = por %p406_p13, %p405_p12 }
  0x22   :  { %p408_p1 = pnand %p407_p0, %p401_p11 }
  0x24   :  { %411 = shalt.err (!%p408_p1)
}
  0x25   :  { %26 = dma.hbm_to_vmem [thread:$0]  %s648_s0, 32, %s24_s12, [#allocation3]  }
  0x26   :  { %s412_s26 = scalar_lea.hbm %s650_s2, 1024 }
  0x27   :  { %p413_p2 = scmp.ne.s32.totalorder %s650_s2, %s412_s26  ;;  %p416_p3 = scmp.lt.u32.totalorder %s412_s26, %s650_s2 }
  0x29   :  { %p418_p4 = pnand %p416_p3, %p413_p2 }
  0x2b   :  { %421 = shalt.err (!%p418_p4)
}
  0x2c   :  { %s422_s9 = scalar_lea.vmem %s45_s14, 1024  ;;  %p427_p6 = scmp.lt.s32.totalorder %s45_s14, %s45_s14 }
  0x2d   :  { %p423_p5 = scmp.ne.s32.totalorder %s45_s14, %s422_s9  ;;  %p428_p7 = scmp.lt.s32.totalorder %s422_s9, %s422_s9 }
  0x2f   :  { %p429_p8 = por %p428_p7, %p427_p6 }
  0x31   :  { %p430_p9 = pnand %p429_p8, %p423_p5 }
  0x33   :  { %433 = shalt.err (!%p430_p9)
}
  0x34   :  { %50 = dma.hbm_to_vmem [thread:$0]  %s650_s2, 1024, %s45_s14, [#allocation6], %s511_s7, %s511_s7, %s512_s8  }
  0x35   :  { %s515_s11 = smov [#allocation8]   ;;  %s434_s16 = scalar_lea.hbm %s651_s3, 2048 }
  0x36   :  { %s56_s12 = sshll.u32 %s515_s11, 4  ;;  %p435_p10 = scmp.ne.s32.totalorder %s651_s3, %s434_s16  ;;  %s57_s12 = int_to_ptr.vmem [resolvable:$true] %s56_s12 }
  0x37   :  { %p438_p11 = scmp.lt.u32.totalorder %s434_s16, %s651_s3 }
  0x39   :  { %p440_p12 = pnand %p438_p11, %p435_p10 }
  0x3b   :  { %443 = shalt.err (!%p440_p12)
}
  0x3c   :  { %s444_s21 = scalar_lea.vmem %s57_s12, 2048  ;;  %p449_p0 = scmp.lt.s32.totalorder %s57_s12, %s57_s12 }
  0x3d   :  { %p445_p13 = scmp.ne.s32.totalorder %s57_s12, %s444_s21  ;;  %p450_p1 = scmp.lt.s32.totalorder %s444_s21, %s444_s21 }
  0x3f   :  { %p451_p2 = por %p450_p1, %p449_p0 }
  0x41   :  { %p452_p3 = pnand %p451_p2, %p445_p13 }
  0x43   :  { %455 = shalt.err (!%p452_p3)
}
  0x44   :  { %62 = dma.hbm_to_vmem [thread:$0]  %s651_s3, 2048, %s57_s12, [#allocation9], %s511_s7, %s511_s7, %s512_s8  }
  0x45   :  { %500 = dma.done.wait [#allocation3], 32  }
  0x46   :  { %501 = vsyncadd [#allocation3], 4294967264 }
  0x47   :  { %502 = dma.done.wait [#allocation6], 3072  }
  0x48   :  { %503 = vsyncadd [#allocation6], 4294964224 }
  0x49   :  { %504 = dma.done.wait [#allocation9], 2048  }
  0x4a   :  { %505 = vsyncadd [#allocation9], 4294965248  ;;  %v516_v0 = vmov 0.0|0.0   ;;  %vm517_vm0 = vmmov 0   ;;  %v518_v1 = vmov 0.0   ;;  %v143_v2 = vld [vmem:[#allocation8] sm:$0xff] }
  0x4b   :  { %331 = vmatprep.subr.bf16.mxu0 %v516_v0  ;;  %328 = vmatprep.mubr.msk.f32.mxu0 %vm517_vm0, %v518_v1  ;;  %v144_v3 = vld [vmem:[#allocation8 + $0x8] sm:$0xff]  ;;  %v145_v4 = vld [vmem:[#allocation8 + $0x10] sm:$0xff]  ;;  %v146_v6 = vld [vmem:[#allocation8 + $0x18] sm:$0xff]  ;;  %vm168_vm1 = vcmask 1041409   ;;  %s519_s8 = smov [#allocation11]  }
  0x4c   :  { %v332_v5 = vpack.c.bf16 %v144_v3, %v143_v2  ;;  %v335_v7 = vpack.c.bf16 %v146_v6, %v145_v4  ;;  %v147_v8 = vld [vmem:[#allocation8 + $0x20] sm:$0xff]  ;;  %v148_v9 = vld [vmem:[#allocation8 + $0x28] sm:$0xff]  ;;  %v149_v11 = vld [vmem:[#allocation8 + $0x30] sm:$0xff]  ;;  %s263_s1 = sshll.u32 %s519_s8, 4  ;;  %s264_s1 = int_to_ptr.vmem [resolvable:$true] %s263_s1 }
  0x4d   :  { %v338_v10 = vpack.c.bf16 %v148_v9, %v147_v8  ;;  %v150_v12 = vld [vmem:[#allocation8 + $0x38] sm:$0xff]  ;;  %v77_v13 = vld [vmem:[#allocation5] sm:$0xff]  ;;  %v78_v16 = vld [vmem:[#allocation5 + $0x8] sm:$0xff]  ;;  %s456_s22 = scalar_lea.vmem %s264_s1, 32  ;;  %p461_p5 = scmp.lt.s32.totalorder %s264_s1, %s264_s1 }
  0x4e   :  { %333 = vmatpush3.bf16.msra.mxu0 %v332_v5  ;;  %v85_v14 = vld [vmem:[#allocation5 + $0x40] sm:$0xff]  ;;  %v86_v17 = vld [vmem:[#allocation5 + $0x48] sm:$0xff]  ;;  %v79_v18 = vld [vmem:[#allocation5 + $0x10] sm:$0xff]  ;;  %v341_v21 = vpack.c.bf16 %v150_v12, %v149_v11  ;;  %p457_p4 = scmp.ne.s32.totalorder %s264_s1, %s456_s22  ;;  %p462_p6 = scmp.lt.s32.totalorder %s456_s22, %s456_s22 }
  0x4f   :  { %334 = vmatprep.subr.bf16.mxu0 %v516_v0  ;;  %v151_v15 = vld [vmem:[#allocation8 + $0x40] sm:$0xff]  ;;  %v87_v19 = vld [vmem:[#allocation5 + $0x50] sm:$0xff]  ;;  %v152_v22 = vld [vmem:[#allocation8 + $0x48] sm:$0xff] }
  0x50   :  { %v93_v20 = vld [vmem:[#allocation7] sm:$0xff]  ;;  %v94_v23 = vld [vmem:[#allocation7 + $0x8] sm:$0xff]  ;;  %v95_v24 = vld [vmem:[#allocation7 + $0x10] sm:$0xff]  ;;  %v344_v34 = vpack.c.bf16 %v152_v22, %v151_v15  ;;  %p463_p7 = por %p462_p6, %p461_p5 }
  0x51   :  { %v101_v25 = vmul.f32 %v93_v20, %v77_v13  ;;  %v109_v26 = vmul.f32 %v93_v20, %v85_v14  ;;  %v80_v27 = vld [vmem:[#allocation5 + $0x18] sm:$0xff]  ;;  %v102_v30 = vmul.f32 %v94_v23, %v78_v16  ;;  %v110_v31 = vmul.f32 %v94_v23, %v86_v17  ;;  %v81_v35 = vld [vmem:[#allocation5 + $0x20] sm:$0xff]  ;;  %v153_v38 = vld [vmem:[#allocation8 + $0x50] sm:$0xff] }
  0x52   :  { %336 = vmatpush3.bf16.msra.mxu0 %v335_v7  ;;  %v88_v28 = vld [vmem:[#allocation5 + $0x58] sm:$0xff]  ;;  %v103_v32 = vmul.f32 %v95_v24, %v79_v18  ;;  %v111_v33 = vmul.f32 %v95_v24, %v87_v19  ;;  %v89_v36 = vld [vmem:[#allocation5 + $0x60] sm:$0xff]  ;;  %v82_v44 = vld [vmem:[#allocation5 + $0x28] sm:$0xff]  ;;  %p464_p8 = pnand %p463_p7, %p457_p4 }
  0x53   :  { %337 = vmatprep.subr.bf16.mxu0 %v516_v0  ;;  %v96_v29 = vld [vmem:[#allocation7 + $0x18] sm:$0xff]  ;;  %v97_v37 = vld [vmem:[#allocation7 + $0x20] sm:$0xff]  ;;  %v117_v42 = vadd.f32 %v102_v30, %v101_v25  ;;  %v130_v43 = vadd.f32 %v110_v31, %v109_v26  ;;  %v90_v45 = vld [vmem:[#allocation5 + $0x68] sm:$0xff] }
  0x54   :  { %v154_v39 = vld [vmem:[#allocation8 + $0x58] sm:$0xff]  ;;  %v104_v40 = vmul.f32 %v96_v29, %v80_v27  ;;  %v112_v41 = vmul.f32 %v96_v29, %v88_v28  ;;  %v98_v46 = vld [vmem:[#allocation7 + $0x28] sm:$0xff]  ;;  %v105_v47 = vmul.f32 %v97_v37, %v81_v35  ;;  %v113_v48 = vmul.f32 %v97_v37, %v89_v36  ;;  %v83_v52 = vld [vmem:[#allocation5 + $0x30] sm:$0xff] }
  0x55   :  { %v118_v49 = vadd.f32 %v117_v42, %v103_v32  ;;  %v131_v50 = vadd.f32 %v130_v43, %v111_v33  ;;  %v347_v51 = vpack.c.bf16 %v154_v39, %v153_v38  ;;  %v91_v53 = vld [vmem:[#allocation5 + $0x70] sm:$0xff]  ;;  %v155_v55 = vld [vmem:[#allocation8 + $0x60] sm:$0xff]  ;;  %v156_v56 = vld [vmem:[#allocation8 + $0x68] sm:$0xff]  ;;  %v106_v57 = vmul.f32 %v98_v46, %v82_v44 }
  0x56   :  { %339 = vmatpush3.bf16.msra.mxu0 %v338_v10  ;;  %v99_v54 = vld [vmem:[#allocation7 + $0x30] sm:$0xff]  ;;  %v114_v58 = vmul.f32 %v98_v46, %v90_v45  ;;  %v84_v61 = vld [vmem:[#allocation5 + $0x38] sm:$0xff]  ;;  %v350_v5 = vpack.c.bf16 %v156_v56, %v155_v55 }
  0x57   :  { %340 = vmatprep.subr.bf16.mxu0 %v516_v0  ;;  %v119_v59 = vadd.f32 %v118_v49, %v104_v40  ;;  %v132_v60 = vadd.f32 %v131_v50, %v112_v41  ;;  %v92_v62 = vld [vmem:[#allocation5 + $0x78] sm:$0xff]  ;;  %v107_v1 = vmul.f32 %v99_v54, %v83_v52  ;;  %v115_v2 = vmul.f32 %v99_v54, %v91_v53  ;;  %v157_v10 = vld [vmem:[#allocation8 + $0x70] sm:$0xff] }
  0x58   :  { %v100_v63 = vld [vmem:[#allocation7 + $0x38] sm:$0xff] }
  0x59   :  { %v120_v3 = vadd.f32 %v119_v59, %v105_v47  ;;  %v133_v4 = vadd.f32 %v132_v60, %v113_v48  ;;  %v108_v6 = vmul.f32 %v100_v63, %v84_v61  ;;  %v116_v7 = vmul.f32 %v100_v63, %v92_v62  ;;  %v158_v11 = vld [vmem:[#allocation8 + $0x78] sm:$0xff] }
  0x5a   :  { %342 = vmatpush3.bf16.msra.mxu0 %v341_v21  ;;  %v353_v14 = vpack.c.bf16 %v158_v11, %v157_v10 }
  0x5b   :  { %343 = vmatprep.subr.bf16.mxu0 %v516_v0  ;;  %v121_v8 = vadd.f32 %v120_v3, %v106_v57  ;;  %v134_v9 = vadd.f32 %v133_v4, %v114_v58 }
  0x5d   :  { %v122_v12 = vadd.f32 %v121_v8, %v107_v1  ;;  %v135_v13 = vadd.f32 %v134_v9, %v115_v2 }
  0x5e   :  { %345 = vmatpush3.bf16.msra.mxu0 %v344_v34 }
  0x5f   :  { %346 = vmatprep.subr.bf16.mxu0 %v516_v0  ;;  %v123_v15 = vadd.f32 %v122_v12, %v108_v6  ;;  %v136_v16 = vadd.f32 %v135_v13, %v116_v7 }
  0x61   :  { %v124_v17 = vrot.slane %v123_v15, 4  ;;  %v137_v18 = vrot.slane %v136_v16, 4 }
  0x62   :  { %348 = vmatpush3.bf16.msra.mxu0 %v347_v51 }
  0x63   :  { %349 = vmatprep.subr.bf16.mxu0 %v516_v0  ;;  %v125_v19 = vadd.f32 %v124_v17, %v123_v15  ;;  %v138_v20 = vadd.f32 %v137_v18, %v136_v16 }
  0x65   :  { %v126_v21 = vrot.slane %v125_v19, 2  ;;  %v139_v22 = vrot.slane %v138_v20, 2 }
  0x66   :  { %351 = vmatpush3.bf16.msra.mxu0 %v350_v5 }
  0x67   :  { %352 = vmatprep.subr.bf16.mxu0 %v516_v0  ;;  %v127_v23 = vadd.f32 %v126_v21, %v125_v19  ;;  %v140_v24 = vadd.f32 %v139_v22, %v138_v20  ;;  %v278_v0 = vld [vmem:[%s652_s4] ss:$0 sm:$0xff] }
  0x69   :  { %v128_v25 = vrot.slane %v127_v23, 1  ;;  %v141_v26 = vrot.slane %v140_v24, 1 }
  0x6a   :  { %354 = vmatpush3.bf16.msra.mxu0 %v353_v14 }
  0x6b   :  { %v129_v27 = vadd.f32 %v128_v25, %v127_v23  ;;  %v142_v28 = vadd.f32 %v141_v26, %v140_v24 }
  0x6d   :  { %v169_v29 = vsel %vm168_vm1, %v142_v28, %v129_v27 }
  0x6e   :  { %329 = vmatmul.mubr.f32.vlgmr.msra.gmra.mrb[0].mxu0 %v169_v29 }
 0x141   :  { %v237_v30 = vpop.f32.mrb[0].mxu0 }
 0x142   :  { %v238_v31 = vadd.f32 %v278_v0, %v237_v30  ;;  %v330_v32 = vpop.f32.mrb[1].mxu0 }
 0x144   :  { %v243_v33 = vmul.f32 1.442695, %v238_v31  ;;  %241 = vst [vmem:[#allocation11] sm:$0x3] %v238_v31 }
 0x145   :  { %467 = shalt.err (!%p464_p8)
}
 0x146   :  { %s468_s25 = scalar_lea.hbm %s654_s6, 32 }
 0x147   :  { %p469_p9 = scmp.ne.s32.totalorder %s654_s6, %s468_s25  ;;  %p472_p10 = scmp.lt.u32.totalorder %s468_s25, %s654_s6 }
 0x149   :  { %p474_p11 = pnand %p472_p10, %p469_p9 }
 0x14b   :  { %477 = shalt.err (!%p474_p11)
}
 0x14c   :  { %266 = dma.vmem_to_hbm [thread:$0]  %s264_s1, 32, %s654_s6, [#allocation12]   ;;  %366 = vpow2.f32 %v243_v33  ;;  %v242_v34 = vld [vmem:[#allocation2] sm:$0x3] }
 0x14d   :  { %s520_s9 = smov [#allocation10]  }
 0x14e   :  { %s253_s0 = sshll.u32 %s520_s9, 4  ;;  %s254_s0 = int_to_ptr.vmem [resolvable:$true] %s253_s0 }
 0x14f   :  { %s478_s10 = scalar_lea.vmem %s254_s0, 32  ;;  %p483_p13 = scmp.lt.s32.totalorder %s254_s0, %s254_s0 }
 0x150   :  { %p479_p12 = scmp.ne.s32.totalorder %s254_s0, %s478_s10  ;;  %p484_p0 = scmp.lt.s32.totalorder %s478_s10, %s478_s10 }
 0x152   :  { %p485_p1 = por %p484_p0, %p483_p13 }
 0x154   :  { %p486_p2 = pnand %p485_p1, %p479_p12 }
 0x156   :  { %v367_v35 = vpop.eup %366 }
 0x157   :  { %v245_v36 = vadd.f32 %v367_v35, %v242_v34 }
 0x159   :  { %246 = vst [vmem:[#allocation10] sm:$0x3] %v245_v36 }
 0x15a   :  { %489 = shalt.err (!%p486_p2)
}
 0x15b   :  { %s490_s13 = scalar_lea.hbm %s653_s5, 32 }
 0x15c   :  { %p491_p3 = scmp.ne.s32.totalorder %s653_s5, %s490_s13  ;;  %p494_p4 = scmp.lt.u32.totalorder %s490_s13, %s653_s5 }
 0x15e   :  { %p496_p5 = pnand %p494_p4, %p491_p3 }
 0x160   :  { %499 = shalt.err (!%p496_p5)
}
 0x161   :  { %256 = dma.vmem_to_hbm [thread:$0]  %s254_s0, 32, %s653_s5, [#allocation4]  }
 0x162   :  { %506 = dma.done.wait [#allocation4], 32  }
 0x163   :  { %507 = vsyncadd [#allocation4], 4294967264 }
 0x164   :  { %508 = dma.done.wait [#allocation12], 32  }
 0x165   :  { %509 = vsyncadd [#allocation12], 4294967264 }
 0x166   :  { %273 = vsyncpa [#allocation3], 1 }
 0x167   :  { %274 = vsyncpa [#allocation6], 1 }
 0x168   :  { %275 = vsyncpa [#allocation9], 1 }
 0x169   :  { %276 = vsyncpa [#allocation4], 1 }
 0x16a   :  { %277 = vsyncpa [#allocation12], 1 }

</bundles_post_ra>
